<compile_context>
chip_gen: v7x
topology: tpu7x:2x2x1
jax: 0.10.0
libtpu: 0.0.40
codegen_flags: <defaults>
</compile_context>

<pallas_src>
import functools
from typing import NamedTuple

import jax
import jax.numpy as jnp
from jax import lax
from jax.experimental import pallas as pl
from jax.experimental.pallas import tpu as pltpu


# ----------------------------------------------------------------------------- helpers
def _round_up(n, m):
    return ((n + m - 1) // m) * m


def _cdiv(a, b):
    return -(-a // b)


def _sigmoid(x):
    # sigmoid(x) == 0.5 * (1 + tanh(x/2)) : one EUP op instead of exp + reciprocal.
    return 0.5 * (1.0 + jnp.tanh(0.5 * x))


def _pad2(a, rows, cols):
    a = jnp.asarray(a, jnp.float32)
    return jnp.pad(a, ((0, rows - a.shape[0]), (0, cols - a.shape[1])))


def _vmem_cap_bytes():
    """~80% of physical VMEM (128 MiB on v5e/v6e, 64 MiB/TC on v7x), capped at 100 MiB."""
    try:
        cap = int(pltpu.get_tpu_info().vmem_capacity_bytes)
    except Exception:  # pragma: no cover - conservative fallback
        cap = 128 << 20
    return int(min(int(cap * 0.8), 100 << 20))


def _pick_batch_tile(B, block_b, sub):
    """Batch tile: sublane-aligned, >=2 grid steps when possible, minimal padding."""
    B_al = _round_up(B, sub)
    gsteps = max(2, _cdiv(B_al, max(block_b, sub)))
    TB = _round_up(_cdiv(B_al, gsteps), sub)
    TB = max(sub, min(TB, _round_up(block_b, sub)))
    return TB, B_al


def _resident_spec(shape):
    """BlockSpec for a weight that stays in VMEM (constant index, single-buffered)."""
    return pl.BlockSpec(shape, lambda i: (0, 0), pipeline_mode=pl.Buffered(1))


# ----------------------------------------------------------------------------- packing
class GRUPacked(NamedTuple):
    w1: jax.Array    # (INp + Hp, 3*Hp): rows [0:IN]=[Wxr|Wxz|Wxg], row IN = biases,
                     #                   rows [INp:INp+H]=[Whr|Whz|0], rest zero.
    whg: jax.Array   # (Hp, Hp)


class PModelPacked(NamedTuple):
    wp1: jax.Array   # (Hp, Pp)
    bp1: jax.Array   # (1, Pp)   f32
    wp2: jax.Array   # (Pp, INp)
    bp2: jax.Array   # (1, INp)  f32


def pack_gru_params(params, *, use_bf16=True):
    """One-time packing of GRUODECell weights (do NOT call per solver step).

    params = (wxr, wxz, wxg, whr, whz, whg, bxr, bxz, bxg); weights are
    (in_features, out_features), biases (1, hidden).
    """
    wxr, wxz, wxg, whr, whz, whg, bxr, bxz, bxg = params
    IN, H = wxr.shape
    INp = _round_up(IN + 1, 128)   # always leaves >=1 padded column for the folded bias
    Hp = _round_up(H, 128)

    def col(wx, wh, bx):
        top = jnp.concatenate(
            [jnp.asarray(wx, jnp.float32),
             jnp.asarray(bx, jnp.float32).reshape(1, H)], axis=0)   # (IN+1, H)
        top = _pad2(top, INp, Hp)
        bot = _pad2(wh, Hp, Hp) if wh is not None else jnp.zeros((Hp, Hp), jnp.float32)
        return jnp.concatenate([top, bot], axis=0)                   # (INp+Hp, Hp)

    w1 = jnp.concatenate([col(wxr, whr, bxr), col(wxz, whz, bxz), col(wxg, None, bxg)],
                         axis=1)                                     # (INp+Hp, 3*Hp)
    whg_p = _pad2(whg, Hp, Hp)
    if use_bf16:
        w1 = w1.astype(jnp.bfloat16)
        whg_p = whg_p.astype(jnp.bfloat16)
    return GRUPacked(w1=w1, whg=whg_p)


def pack_p_model_params(p_params, *, gru_in_features, use_bf16=True):
    """p_model = Linear(H, p_hidden) -> ReLU -> Linear(p_hidden, 2*input_size).

    p_params = (w1 (H, p_hidden), b1 (p_hidden,), w2 (p_hidden, 2*input_size), b2).
    `gru_in_features` = 2*input_size so the padded p width matches the GRU kernel.
    """
    w1, b1, w2, b2 = p_params
    H, P = w1.shape
    OUT = w2.shape[1]
    assert OUT == gru_in_features
    Hp = _round_up(H, 128)
    Pp = _round_up(P, 128)
    INp = _round_up(gru_in_features + 1, 128)
    wp1 = _pad2(w1, Hp, Pp)
    bp1 = _pad2(jnp.reshape(jnp.asarray(b1, jnp.float32), (1, P)), 1, Pp)
    wp2 = _pad2(w2, Pp, INp)
    bp2 = _pad2(jnp.reshape(jnp.asarray(b2, jnp.float32), (1, OUT)), 1, INp)
    if use_bf16:
        wp1 = wp1.astype(jnp.bfloat16)
        wp2 = wp2.astype(jnp.bfloat16)
    return PModelPacked(wp1, bp1, wp2, bp2)


# ----------------------------------------------------------------------------- kernel 1
def _gru_cell_kernel(x_ref, h_ref, w1_ref, whg_ref, dh_ref):
    hp = h_ref.shape[-1]
    cd = w1_ref.dtype
    # One MXU call for all three gate pre-activations (K = INp + Hp; bias folded in).
    a = jnp.concatenate([x_ref[...], h_ref[...]], axis=1)          # (TB, INp+Hp)
    xw = jnp.dot(a, w1_ref[...], preferred_element_type=jnp.float32)
    h = h_ref[...].astype(jnp.float32)
    r = _sigmoid(xw[:, 0 * hp:1 * hp])
    z = _sigmoid(xw[:, 1 * hp:2 * hp])
    g = jnp.tanh(xw[:, 2 * hp:3 * hp]
                 + jnp.dot((r * h).astype(cd), whg_ref[...],
                           preferred_element_type=jnp.float32))
    dh_ref[...] = ((1.0 - z) * (g - h)).astype(dh_ref.dtype)


@functools.partial(jax.jit, static_argnames=("block_b",))
def gru_ode_cell(x, h, packed: GRUPacked, *, block_b=512):
    """x: (B, input_size), h: (B, hidden_size) -> dh: (B, hidden_size) float32."""
    B, IN = x.shape
    H = h.shape[1]
    w1, whg = packed.w1, packed.whg
    Hp = whg.shape[0]
    INp = w1.shape[0] - Hp
    cd = w1.dtype
    assert INp == _round_up(IN + 1, 128) and Hp == _round_up(H, 128), \
        "packed GRU params do not match x/h shapes"

    itemsize = jnp.dtype(cd).itemsize
    sub = 8 if itemsize >= 4 else 16
    TB, B_al = _pick_batch_tile(B, block_b, sub)

    weight_bytes = (w1.size + whg.size) * itemsize                # single-buffered residents
    cap = _vmem_cap_bytes()

    def budget(tb):
        act = 2 * (tb * (INp + Hp) * itemsize + tb * Hp * 4)      # x/h in + dh out, double-buffered
        interm = tb * (INp + Hp) * itemsize + tb * 8 * Hp * 4     # concat + xw + r/z/g/(r*h)
        return weight_bytes + act + interm + (2 << 20)

    while budget(TB) > cap and TB > sub:
        TB = max(sub, _round_up(TB // 2, sub))
    Bp = _round_up(B_al, TB)
    grid = (Bp // TB,)

    # Bias fold: column IN of the padded x block is 1.0; row IN of w1 holds (bxr|bxz|bxg).
    xb = jnp.concatenate([x.astype(cd), jnp.ones((B, 1), cd)], axis=1)
    xp = jnp.pad(xb, ((0, Bp - B), (0, INp - (IN + 1))))
    hpad = jnp.pad(h.astype(cd), ((0, Bp - B), (0, Hp - H)))

    in_specs = [
        pl.BlockSpec((TB, INp), lambda i: (i, 0)),
        pl.BlockSpec((TB, Hp), lambda i: (i, 0)),
        _resident_spec((INp + Hp, 3 * Hp)),
        _resident_spec((Hp, Hp)),
    ]
    out_specs = pl.BlockSpec((TB, Hp), lambda i: (i, 0))

    vmem_limit = int(min(max(budget(TB), 16 << 20), cap))
    cost = pl.CostEstimate(
        flops=2 * Bp * ((INp + Hp) * 3 * Hp + Hp * Hp),
        transcendentals=3 * Bp * Hp,
        bytes_accessed=Bp * (INp + Hp) * itemsize + weight_bytes + Bp * Hp * 4,
    )

    dh = pl.pallas_call(
        _gru_cell_kernel,
        out_shape=jax.ShapeDtypeStruct((Bp, Hp), jnp.float32),
        grid_spec=pltpu.PrefetchScalarGridSpec(
            num_scalar_prefetch=0, grid=grid, in_specs=in_specs, out_specs=out_specs),
        compiler_params=pltpu.CompilerParams(
            dimension_semantics=("parallel",), vmem_limit_bytes=vmem_limit),
        cost_estimate=cost,
    )(xp, hpad, w1, whg)
    return dh[:B, :H]


# ----------------------------------------------------------------------------- kernel 2
def _ode_euler_kernel(h_ref, p_ref, w1_ref, whg_ref, wp1_ref, bp1_ref, wp2_ref, bp2_ref,
                      h_out_ref, p_out_ref, *, n_steps, delta_t, in_features):
    hp = h_ref.shape[-1]
    inp = p_ref.shape[-1]
    cd = w1_ref.dtype
    f32 = jnp.float32
    # 1.0 at the folded-bias column (index `in_features`, a zero-padded column of p).
    bias_lane = (lax.broadcasted_iota(jnp.int32, (1, inp), 1) == in_features).astype(f32)

    def step(_, carry):
        h, p = carry                                                # f32 carries
        a = jnp.concatenate([(p + bias_lane).astype(cd), h.astype(cd)], axis=1)
        xw = jnp.dot(a, w1_ref[...], preferred_element_type=f32)
        r = _sigmoid(xw[:, 0 * hp:1 * hp])
        z = _sigmoid(xw[:, 1 * hp:2 * hp])
        g = jnp.tanh(xw[:, 2 * hp:3 * hp]
                     + jnp.dot((r * h).astype(cd), whg_ref[...],
                               preferred_element_type=f32))
        h = h + delta_t * (1.0 - z) * (g - h)                       # Euler update
        q = jnp.maximum(
            jnp.dot(h.astype(cd), wp1_ref[...], preferred_element_type=f32) + bp1_ref[...],
            0.0)                                                    # p_model hidden + ReLU
        p = jnp.dot(q.astype(cd), wp2_ref[...], preferred_element_type=f32) + bp2_ref[...]
        return h, p

    h, p = lax.fori_loop(0, n_steps,
                         step, (h_ref[...].astype(f32), p_ref[...].astype(f32)))
    h_out_ref[...] = h.astype(h_out_ref.dtype)
    p_out_ref[...] = p.astype(p_out_ref.dtype)


@functools.partial(jax.jit, static_argnames=("n_steps", "delta_t", "block_b"))
def gru_ode_euler_steps(h, p, gru_packed: GRUPacked, p_packed: PModelPacked,
                        *, n_steps, delta_t, block_b=256):
    """n_steps of: h <- h + delta_t*GRUODECell(p, h); p <- p_model(h). Weights stay in VMEM."""
    B, H = h.shape
    IN = p.shape[1]
    w1, whg = gru_packed.w1, gru_packed.whg
    wp1, bp1, wp2, bp2 = p_packed
    Hp = whg.shape[0]
    INp = w1.shape[0] - Hp
    Pp = wp1.shape[1]
    cd = w1.dtype
    assert INp == _round_up(IN + 1, 128) and Hp == _round_up(H, 128)
    assert wp1.shape[0] == Hp and wp2.shape == (Pp, INp)

    itemsize = jnp.dtype(cd).itemsize
    sub = 8   # h/p stream in f32
    TB, B_al = _pick_batch_tile(B, block_b, sub)

    weight_bytes = ((w1.size + whg.size + wp1.size + wp2.size) * itemsize
                    + (bp1.size + bp2.size) * 4)
    cap = _vmem_cap_bytes()

    def budget(tb):
        act = 2 * 2 * tb * (Hp + INp) * 4                           # h/p in + out, double-buffered
        interm = tb * (INp + Hp) * itemsize + tb * (3 * Hp + 4 * Hp + Pp + INp) * 4
        return weight_bytes + act + interm + (2 << 20)

    while budget(TB) > cap and TB > sub:
        TB = max(sub, _round_up(TB // 2, sub))
    Bp = _round_up(B_al, TB)
    grid = (Bp // TB,)

    hpad = jnp.pad(h.astype(jnp.float32), ((0, Bp - B), (0, Hp - H)))
    ppad = jnp.pad(p.astype(jnp.float32), ((0, Bp - B), (0, INp - IN)))

    in_specs = [
        pl.BlockSpec((TB, Hp), lambda i: (i, 0)),
        pl.BlockSpec((TB, INp), lambda i: (i, 0)),
        _resident_spec((INp + Hp, 3 * Hp)),
        _resident_spec((Hp, Hp)),
        _resident_spec((Hp, Pp)),
        _resident_spec((1, Pp)),
        _resident_spec((Pp, INp)),
        _resident_spec((1, INp)),
    ]
    out_specs = (pl.BlockSpec((TB, Hp), lambda i: (i, 0)),
                 pl.BlockSpec((TB, INp), lambda i: (i, 0)))

    kernel = functools.partial(_ode_euler_kernel, n_steps=int(n_steps),
                               delta_t=float(delta_t), in_features=IN)
    vmem_limit = int(min(max(budget(TB), 16 << 20), cap))
    flops_step = 2 * Bp * ((INp + Hp) * 3 * Hp + Hp * Hp + Hp * Pp + Pp * INp)
    cost = pl.CostEstimate(
        flops=int(n_steps) * flops_step,
        transcendentals=int(n_steps) * 3 * Bp * Hp,
        bytes_accessed=2 * Bp * (Hp + INp) * 4 + weight_bytes,
    )

    h_out, p_out = pl.pallas_call(
        kernel,
        out_shape=(jax.ShapeDtypeStruct((Bp, Hp), jnp.float32),
                   jax.ShapeDtypeStruct((Bp, INp), jnp.float32)),
        grid_spec=pltpu.PrefetchScalarGridSpec(
            num_scalar_prefetch=0, grid=grid, in_specs=in_specs, out_specs=out_specs),
        compiler_params=pltpu.CompilerParams(
            dimension_semantics=("parallel",), vmem_limit_bytes=vmem_limit),
        cost_estimate=cost,
    )(hpad, ppad, w1, whg, wp1, bp1, wp2, bp2)
    return h_out[:B, :H], p_out[:B, :IN]


# ----------------------------------------------------------------------------- references / init
def gru_ode_cell_ref(x, h, params):
    wxr, wxz, wxg, whr, whz, whg, bxr, bxz, bxg = params
    r = jax.nn.sigmoid(x @ wxr + bxr + h @ whr)
    z = jax.nn.sigmoid(x @ wxz + bxz + h @ whz)
    g = jnp.tanh(x @ wxg + bxg + (r * h) @ whg)
    return (1.0 - z) * (g - h)


def p_model_ref(h, p_params):
    w1, b1, w2, b2 = p_params
    return jnp.maximum(h @ w1 + b1, 0.0) @ w2 + b2


def ode_euler_ref(h, p, gru_params, p_params, n_steps, delta_t):
    for _ in range(n_steps):
        h = h + delta_t * gru_ode_cell_ref(p, h, gru_params)
        p = p_model_ref(h, p_params)
    return h, p


def init_gru_params(key, input_size, hidden_size, dtype=jnp.float32):
    """PyTorch-Linear-style init; weights pre-transposed to (in, out)."""
    ks = jax.random.split(key, 9)
    bx, bh = 1.0 / input_size ** 0.5, 1.0 / hidden_size ** 0.5
    u = lambda k, s, b: jax.random.uniform(k, s, dtype, minval=-b, maxval=b)
    return (u(ks[0], (input_size, hidden_size), bx), u(ks[1], (input_size, hidden_size), bx),
            u(ks[2], (input_size, hidden_size), bx), u(ks[3], (hidden_size, hidden_size), bh),
            u(ks[4], (hidden_size, hidden_size), bh), u(ks[5], (hidden_size, hidden_size), bh),
            u(ks[6], (1, hidden_size), bx), u(ks[7], (1, hidden_size), bx),
            u(ks[8], (1, hidden_size), bx))


def init_p_model_params(key, hidden_size, p_hidden, input_size, dtype=jnp.float32):
    ks = jax.random.split(key, 4)
    b1, b2 = 1.0 / hidden_size ** 0.5, 1.0 / p_hidden ** 0.5
    u = lambda k, s, b: jax.random.uniform(k, s, dtype, minval=-b, maxval=b)
    return (u(ks[0], (hidden_size, p_hidden), b1), u(ks[1], (p_hidden,), b1),
            u(ks[2], (p_hidden, 2 * input_size), b2), u(ks[3], (2 * input_size,), b2))


# ----------------------------------------------------------------------------- demo / checks
if __name__ == "__main__":
    # gruodebayes_original(input_size=8, hidden_size=32, p_hidden=16, ...):
    # gru_c = GRUODECell(2*input_size=16, hidden_size=32), small batch of trajectories.
    input_size, hidden_size, p_hidden = 8, 32, 16
    B = 8
    IN = 2 * input_size
    key = jax.random.PRNGKey(0)
    kx, kh, kg, kp = jax.random.split(key, 4)

    x = jax.random.normal(kx, (B, IN), jnp.float32)
    h = jax.random.uniform(kh, (B, hidden_size), jnp.float32)
    gru_params = init_gru_params(kg, IN, hidden_size)
    pm_params = init_p_model_params(kp, hidden_size, p_hidden, input_size)

    # --- single GRUODECell derivative step -------------------------------------------
    packed_f32 = pack_gru_params(gru_params, use_bf16=False)     # exact-parity path
    dh = gru_ode_cell(x, h, packed_f32)
    jax.block_until_ready(dh)
    dh_ref = gru_ode_cell_ref(x, h, gru_params)
    assert dh.shape == (B, hidden_size)
    assert jnp.allclose(dh, dh_ref, atol=1e-5, rtol=1e-5), "f32 GRUODECell mismatch"

    packed_bf16 = pack_gru_params(gru_params, use_bf16=True)     # default perf path
    dh_bf16 = gru_ode_cell(x, h, packed_bf16)
    jax.block_until_ready(dh_bf16)
    assert jnp.allclose(dh_bf16, dh_ref, atol=5e-2, rtol=5e-2), "bf16 GRUODECell mismatch"

    # --- fused multi-step Euler ode_step loop (impute=True) ---------------------------
    n_steps, delta_t = 5, 0.05
    p0 = p_model_ref(h, pm_params)
    pm_f32 = pack_p_model_params(pm_params, gru_in_features=IN, use_bf16=False)
    h_out, p_out = gru_ode_euler_steps(h, p0, packed_f32, pm_f32,
                                       n_steps=n_steps, delta_t=delta_t)
    jax.block_until_ready((h_out, p_out))
    h_r, p_r = ode_euler_ref(h, p0, gru_params, pm_params, n_steps, delta_t)
    assert jnp.allclose(h_out, h_r, atol=5e-4, rtol=5e-4), "f32 fused ODE mismatch (h)"
    assert jnp.allclose(p_out, p_r, atol=5e-4, rtol=5e-4), "f32 fused ODE mismatch (p)"

    pm_bf16 = pack_p_model_params(pm_params, gru_in_features=IN, use_bf16=True)
    h_bf, p_bf = gru_ode_euler_steps(h, p0, packed_bf16, pm_bf16,
                                     n_steps=n_steps, delta_t=delta_t)
    jax.block_until_ready((h_bf, p_bf))
    assert jnp.allclose(h_bf, h_r, atol=5e-2, rtol=5e-2), "bf16 fused ODE mismatch"

    print("KERNEL_OK")
</pallas_src>

<mosaic_0001>
module attributes {stable_mosaic.version = 11 : i64} {
  func.func @_gru_cell_kernel(%arg0: i32, %arg1: memref<8x128xf32, #tpu.memory_space<vmem>>, %arg2: memref<8x128xf32, #tpu.memory_space<vmem>>, %arg3: memref<256x384xf32, #tpu.memory_space<vmem>>, %arg4: memref<128x128xf32, #tpu.memory_space<vmem>>, %arg5: memref<8x128xf32, #tpu.memory_space<vmem>>) attributes {dimension_semantics = [#tpu.dimension_semantics<parallel>], iteration_bounds = array<i64: 1>, scalar_prefetch = 0 : i64, scratch_operands = 0 : i64, tpu.core_type = #tpu.core_type<tc>, window_params = [{transform_indices = @transform_0, window_bounds = array<i64: 8, 128>}, {transform_indices = @transform_1, window_bounds = array<i64: 8, 128>}, {pipeline_mode = #tpu.pipeline_mode<synchronous>, transform_indices = @transform_2, window_bounds = array<i64: 256, 384>}, {pipeline_mode = #tpu.pipeline_mode<synchronous>, transform_indices = @transform_3, window_bounds = array<i64: 128, 128>}, {transform_indices = @transform_4, window_bounds = array<i64: 8, 128>}]} {
    %c0 = arith.constant 0 : index
    %c0_0 = arith.constant 0 : index
    %0 = vector.load %arg1[%c0, %c0_0] : memref<8x128xf32, #tpu.memory_space<vmem>>, vector<8x128xf32>
    %c0_1 = arith.constant 0 : index
    %c0_2 = arith.constant 0 : index
    %1 = vector.load %arg2[%c0_1, %c0_2] : memref<8x128xf32, #tpu.memory_space<vmem>>, vector<8x128xf32>
    %2 = tpu.concatenate %0, %1 in 1 : vector<8x128xf32>, vector<8x128xf32> -> vector<8x256xf32>
    %c0_3 = arith.constant 0 : index
    %c0_4 = arith.constant 0 : index
    %3 = vector.load %arg3[%c0_3, %c0_4] : memref<256x384xf32, #tpu.memory_space<vmem>>, vector<256x384xf32>
    %cst = arith.constant dense<0.000000e+00> : vector<8x384xf32>
    %4 = tpu.matmul %2, %3, %cst {dimension_numbers = #tpu.dot_dimension_numbers<[1], [0], [0], [1], [0, 0, 1, 1], [], []>} : vector<8x256xf32>, vector<256x384xf32>, vector<8x384xf32> -> vector<8x384xf32>
    %c0_5 = arith.constant 0 : index
    %c0_6 = arith.constant 0 : index
    %5 = vector.load %arg2[%c0_5, %c0_6] : memref<8x128xf32, #tpu.memory_space<vmem>>, vector<8x128xf32>
    %6 = vector.extract_strided_slice %4 {offsets = [0, 0], sizes = [8, 128], strides = [1, 1]} : vector<8x384xf32> to vector<8x128xf32>
    %cst_7 = arith.constant 5.000000e-01 : f32
    %7 = vector.broadcast %cst_7 : f32 to vector<8x128xf32>
    %8 = arith.mulf %7, %6 : vector<8x128xf32>
    %9 = math.tanh %8 : vector<8x128xf32>
    %cst_8 = arith.constant 1.000000e+00 : f32
    %10 = vector.broadcast %cst_8 : f32 to vector<8x128xf32>
    %11 = arith.addf %10, %9 : vector<8x128xf32>
    %cst_9 = arith.constant 5.000000e-01 : f32
    %12 = vector.broadcast %cst_9 : f32 to vector<8x128xf32>
    %13 = arith.mulf %12, %11 : vector<8x128xf32>
    %14 = vector.extract_strided_slice %4 {offsets = [0, 128], sizes = [8, 128], strides = [1, 1]} : vector<8x384xf32> to vector<8x128xf32>
    %cst_10 = arith.constant 5.000000e-01 : f32
    %15 = vector.broadcast %cst_10 : f32 to vector<8x128xf32>
    %16 = arith.mulf %15, %14 : vector<8x128xf32>
    %17 = math.tanh %16 : vector<8x128xf32>
    %cst_11 = arith.constant 1.000000e+00 : f32
    %18 = vector.broadcast %cst_11 : f32 to vector<8x128xf32>
    %19 = arith.addf %18, %17 : vector<8x128xf32>
    %cst_12 = arith.constant 5.000000e-01 : f32
    %20 = vector.broadcast %cst_12 : f32 to vector<8x128xf32>
    %21 = arith.mulf %20, %19 : vector<8x128xf32>
    %22 = vector.extract_strided_slice %4 {offsets = [0, 256], sizes = [8, 128], strides = [1, 1]} : vector<8x384xf32> to vector<8x128xf32>
    %23 = arith.mulf %13, %5 : vector<8x128xf32>
    %c0_13 = arith.constant 0 : index
    %c0_14 = arith.constant 0 : index
    %24 = vector.load %arg4[%c0_13, %c0_14] : memref<128x128xf32, #tpu.memory_space<vmem>>, vector<128x128xf32>
    %cst_15 = arith.constant dense<0.000000e+00> : vector<8x128xf32>
    %25 = tpu.matmul %23, %24, %cst_15 {dimension_numbers = #tpu.dot_dimension_numbers<[1], [0], [0], [1], [0, 0, 1, 1], [], []>} : vector<8x128xf32>, vector<128x128xf32>, vector<8x128xf32> -> vector<8x128xf32>
    %26 = arith.addf %22, %25 : vector<8x128xf32>
    %27 = math.tanh %26 : vector<8x128xf32>
    %cst_16 = arith.constant 1.000000e+00 : f32
    %28 = vector.broadcast %cst_16 : f32 to vector<8x128xf32>
    %29 = arith.subf %28, %21 : vector<8x128xf32>
    %30 = arith.subf %27, %5 : vector<8x128xf32>
    %31 = arith.mulf %29, %30 : vector<8x128xf32>
    %c0_17 = arith.constant 0 : index
    %c0_18 = arith.constant 0 : index
    %32 = vector.load %arg5[%c0_17, %c0_18] : memref<8x128xf32, #tpu.memory_space<vmem>>, vector<8x128xf32>
    tpu.vector_store %arg5[%c0_17, %c0_18], %31 {strides = array<i32>} : memref<8x128xf32, #tpu.memory_space<vmem>>, vector<8x128xf32>,
    return
  }
  func.func @transform_0(%arg0: i32) -> (i32, i32) {
    %c0_i32 = arith.constant 0 : i32
    %c0_i32_0 = arith.constant 0 : i32
    return %arg0, %c0_i32 : i32, i32
  }
  func.func @transform_1(%arg0: i32) -> (i32, i32) {
    %c0_i32 = arith.constant 0 : i32
    %c0_i32_0 = arith.constant 0 : i32
    return %arg0, %c0_i32 : i32, i32
  }
  func.func @transform_2(%arg0: i32) -> (i32, i32) {
    %c0_i32 = arith.constant 0 : i32
    %c0_i32_0 = arith.constant 0 : i32
    %c0_i32_1 = arith.constant 0 : i32
    return %c0_i32, %c0_i32_0 : i32, i32
  }
  func.func @transform_3(%arg0: i32) -> (i32, i32) {
    %c0_i32 = arith.constant 0 : i32
    %c0_i32_0 = arith.constant 0 : i32
    %c0_i32_1 = arith.constant 0 : i32
    return %c0_i32, %c0_i32_0 : i32, i32
  }
  func.func @transform_4(%arg0: i32) -> (i32, i32) {
    %c0_i32 = arith.constant 0 : i32
    %c0_i32_0 = arith.constant 0 : i32
    return %arg0, %c0_i32 : i32, i32
  }
}

</mosaic_0001>

<bundles_post_ra>
// kernel: gru_ode_cell.1
= control target key start
LH: loop header
LB: loop body
LE: loop exit
PB: predicated region body
PF: predicated region fallthrough
CT: control target
= control target key end

     0   :  { %9 = vsyncpa [#allocation3], 0  ;;  %s780_s0 = inlined_call_operand.vmem [shape: f32[8,128], index: 0, kind: input, shape index: {}]   ;;  %s781_s1 = inlined_call_operand.vmem [shape: f32[8,128], index: 1, kind: input, shape index: {}]   ;;  %s782_s2 = inlined_call_operand.hbm [shape: f32[256,384], index: 2, kind: input, shape index: {}]   ;;  %s783_s3 = inlined_call_operand.hbm [shape: f32[128,128], index: 3, kind: input, shape index: {}]   ;;  %s784_s4 = inlined_call_operand.hbm [shape: f32[8,128], index: 4, kind: output, shape index: {}]  }
   0x1   :  { %10 = vsyncpa [#allocation6], 0 }
   0x2   :  { %11 = vsyncpa [#allocation4], 0  ;;  %s697_s15 = smov [#allocation2]   ;;  %s625_s19 = scalar_lea.hbm %s782_s2, 12288 }
   0x3   :  { %s21_s16 = sshll.u32 %s697_s15, 4  ;;  %p626_p0 = scmp.ne.s32.totalorder %s782_s2, %s625_s19  ;;  %s22_s16 = int_to_ptr.vmem [resolvable:$true] %s21_s16 }
   0x4   :  { %p629_p1 = scmp.lt.u32.totalorder %s625_s19, %s782_s2 }
   0x6   :  { %p631_p2 = pnand %p629_p1, %p626_p0 }
   0x8   :  { %634 = shalt.err (!%p631_p2)
}
   0x9   :  { %s635_s24 = scalar_lea.vmem %s22_s16, 12288  ;;  %p640_p4 = scmp.lt.s32.totalorder %s22_s16, %s22_s16 }
   0xa   :  { %p636_p3 = scmp.ne.s32.totalorder %s22_s16, %s635_s24  ;;  %p641_p5 = scmp.lt.s32.totalorder %s635_s24, %s635_s24 }
   0xc   :  { %p642_p6 = por %p641_p5, %p640_p4 }
   0xe   :  { %p643_p7 = pnand %p642_p6, %p636_p3 }
  0x10   :  { %646 = shalt.err (!%p643_p7)
}
  0x11   :  { %s698_s25 = smov 384   ;;  %s699_s26 = smov 24  }
  0x12   :  { %27 = dma.hbm_to_vmem [thread:$0]  %s782_s2, 12288, %s22_s16, [#allocation3], %s698_s25, %s698_s25, %s699_s26  }
  0x13   :  { %s700_s29 = smov [#allocation5]   ;;  %s647_s7 = scalar_lea.hbm %s783_s3, 2048 }
  0x14   :  { %s33_s30 = sshll.u32 %s700_s29, 4  ;;  %p648_p8 = scmp.ne.s32.totalorder %s783_s3, %s647_s7  ;;  %s34_s30 = int_to_ptr.vmem [resolvable:$true] %s33_s30 }
  0x15   :  { %p651_p9 = scmp.lt.u32.totalorder %s647_s7, %s783_s3 }
  0x17   :  { %p653_p10 = pnand %p651_p9, %p648_p8 }
  0x19   :  { %656 = shalt.err (!%p653_p10)
}
  0x1a   :  { %s657_s12 = scalar_lea.vmem %s34_s30, 2048  ;;  %p662_p12 = scmp.lt.s32.totalorder %s34_s30, %s34_s30 }
  0x1b   :  { %p658_p11 = scmp.ne.s32.totalorder %s34_s30, %s657_s12  ;;  %p663_p13 = scmp.lt.s32.totalorder %s657_s12, %s657_s12 }
  0x1d   :  { %p664_p0 = por %p663_p13, %p662_p12 }
  0x1f   :  { %p665_p1 = pnand %p664_p0, %p658_p11 }
  0x21   :  { %668 = shalt.err (!%p665_p1)
}
  0x22   :  { %s701_s2 = smov 128   ;;  %s702_s13 = smov 8  }
  0x23   :  { %39 = dma.hbm_to_vmem [thread:$0]  %s783_s3, 2048, %s34_s30, [#allocation6], %s701_s2, %s701_s2, %s702_s13  }
  0x24   :  { %691 = dma.done.wait [#allocation3], 12288  }
  0x25   :  { %692 = vsyncadd [#allocation3], 4294955008 }
  0x26   :  { %693 = dma.done.wait [#allocation6], 2048  }
  0x27   :  { %694 = vsyncadd [#allocation6], 4294965248  ;;  %v49_v0 = vld [vmem:[#allocation2 + $0x8] sm:$0xff]  ;;  %v52_v1 = vld [vmem:[#allocation2 + $0x20] sm:$0xff]  ;;  %vm704_vm0 = vmmov 0  }
  0x28   :  { %v48_v2 = vld [vmem:[#allocation2] sm:$0xff]  ;;  %v489_v3 = vpack.c.bf16 %v52_v1, %v49_v0  ;;  %v51_v4 = vld [vmem:[#allocation2 + $0x18] sm:$0xff]  ;;  %v58_v6 = vld [vmem:[#allocation2 + $0x50] sm:$0xff] }
  0x29   :  { %v55_v5 = vld [vmem:[#allocation2 + $0x38] sm:$0xff]  ;;  %v491_v7 = vpack.c.bf16 %v51_v4, %v48_v2  ;;  %v54_v9 = vld [vmem:[#allocation2 + $0x30] sm:$0xff]  ;;  %v57_v10 = vld [vmem:[#allocation2 + $0x48] sm:$0xff] }
  0x2a   :  { %v493_v8 = vpack.c.bf16 %v58_v6, %v55_v5  ;;  %v61_v11 = vld [vmem:[#allocation2 + $0x68] sm:$0xff]  ;;  %490 = vmatprep.subr.bf16.mxu0 %v489_v3  ;;  %v64_v12 = vld [vmem:[#allocation2 + $0x80] sm:$0xff]  ;;  %v495_v13 = vpack.c.bf16 %v57_v10, %v54_v9  ;;  %v63_v16 = vld [vmem:[#allocation2 + $0x78] sm:$0xff] }
  0x2b   :  { %492 = vmatpush1.bf16.msra.mxu0 %v491_v7  ;;  %v497_v14 = vpack.c.bf16 %v64_v12, %v61_v11  ;;  %v60_v15 = vld [vmem:[#allocation2 + $0x60] sm:$0xff]  ;;  %v67_v17 = vld [vmem:[#allocation2 + $0x98] sm:$0xff]  ;;  %v70_v18 = vld [vmem:[#allocation2 + $0xb0] sm:$0xff] }
  0x2c   :  { %494 = vmatprep.subr.bf16.mxu0 %v493_v8  ;;  %v499_v19 = vpack.c.bf16 %v63_v16, %v60_v15  ;;  %v501_v20 = vpack.c.bf16 %v70_v18, %v67_v17  ;;  %v66_v21 = vld [vmem:[#allocation2 + $0x90] sm:$0xff]  ;;  %v69_v22 = vld [vmem:[#allocation2 + $0xa8] sm:$0xff]  ;;  %v76_v24 = vld [vmem:[#allocation2 + $0xe0] sm:$0xff] }
  0x2d   :  { %v73_v23 = vld [vmem:[#allocation2 + $0xc8] sm:$0xff]  ;;  %v503_v25 = vpack.c.bf16 %v69_v22, %v66_v21  ;;  %v72_v27 = vld [vmem:[#allocation2 + $0xc0] sm:$0xff]  ;;  %v75_v28 = vld [vmem:[#allocation2 + $0xd8] sm:$0xff] }
  0x2e   :  { %v505_v26 = vpack.c.bf16 %v76_v24, %v73_v23  ;;  %v79_v29 = vld [vmem:[#allocation2 + $0xf8] sm:$0xff]  ;;  %v82_v30 = vld [vmem:[#allocation2 + $0x110] sm:$0xff]  ;;  %v507_v31 = vpack.c.bf16 %v75_v28, %v72_v27  ;;  %v81_v34 = vld [vmem:[#allocation2 + $0x108] sm:$0xff] }
  0x2f   :  { %496 = vmatpush1.bf16.msra.mxu0 %v495_v13  ;;  %v509_v32 = vpack.c.bf16 %v82_v30, %v79_v29  ;;  %v78_v33 = vld [vmem:[#allocation2 + $0xf0] sm:$0xff]  ;;  %v85_v35 = vld [vmem:[#allocation2 + $0x128] sm:$0xff]  ;;  %v88_v36 = vld [vmem:[#allocation2 + $0x140] sm:$0xff] }
  0x30   :  { %498 = vmatprep.subr.bf16.mxu0 %v497_v14  ;;  %v511_v37 = vpack.c.bf16 %v81_v34, %v78_v33  ;;  %v84_v38 = vld [vmem:[#allocation2 + $0x120] sm:$0xff]  ;;  %v87_v39 = vld [vmem:[#allocation2 + $0x138] sm:$0xff]  ;;  %v513_v40 = vpack.c.bf16 %v88_v36, %v85_v35  ;;  %v94_v42 = vld [vmem:[#allocation2 + $0x170] sm:$0xff] }
  0x31   :  { %v91_v41 = vld [vmem:[#allocation2 + $0x158] sm:$0xff]  ;;  %v759_v43 = vld [vmem:[%s781_s1] sm:$0xff]  ;;  %v101_v45 = vld [vmem:[#allocation2 + $0x1a8] sm:$0xff]  ;;  %v515_v51 = vpack.c.bf16 %v87_v39, %v84_v38 }
  0x32   :  { %208 = vmatprep.mubr.f32.mxu0 %v759_v43  ;;  %v98_v44 = vld [vmem:[#allocation2 + $0x190] sm:$0xff]  ;;  %279 = vmatprep.mubr.f32.mxu1 %v759_v43  ;;  %v53_v48 = vld [vmem:[#allocation2 + $0x28] sm:$0xff]  ;;  %v104_v49 = vld [vmem:[#allocation2 + $0x1c0] sm:$0xff]  ;;  %v517_v57 = vpack.c.bf16 %v94_v42, %v91_v41 }
  0x33   :  { %500 = vmatpush1.bf16.msra.mxu0 %v499_v19  ;;  %v50_v46 = vld [vmem:[#allocation2 + $0x10] sm:$0xff]  ;;  %v553_v47 = vpack.c.bf16 %v101_v45, %v98_v44  ;;  %v107_v50 = vld [vmem:[#allocation2 + $0x1d8] sm:$0xff]  ;;  %v56_v54 = vld [vmem:[#allocation2 + $0x40] sm:$0xff] }
  0x34   :  { %502 = vmatprep.subr.bf16.mxu0 %v501_v20  ;;  %v555_v52 = vpack.c.bf16 %v53_v48, %v50_v46  ;;  %v557_v53 = vpack.c.bf16 %v107_v50, %v104_v49  ;;  %v59_v55 = vld [vmem:[#allocation2 + $0x58] sm:$0xff]  ;;  %v110_v56 = vld [vmem:[#allocation2 + $0x1f0] sm:$0xff]  ;;  %v93_v59 = vld [vmem:[#allocation2 + $0x168] sm:$0xff] }
  0x35   :  { %v90_v58 = vld [vmem:[#allocation2 + $0x150] sm:$0xff]  ;;  %554 = vmatprep.subr.bf16.mxu1 %v553_v47  ;;  %v113_v60 = vld [vmem:[#allocation2 + $0x208] sm:$0xff]  ;;  %v100_v62 = vld [vmem:[#allocation2 + $0x1a0] sm:$0xff]  ;;  %v559_v63 = vpack.c.bf16 %v59_v55, %v56_v54 }
  0x36   :  { %v97_v61 = vld [vmem:[#allocation2 + $0x188] sm:$0xff]  ;;  %556 = vmatpush3.bf16.msra.mxu1 %v555_v52  ;;  %v561_v0 = vpack.c.bf16 %v113_v60, %v110_v56  ;;  %v62_v1 = vld [vmem:[#allocation2 + $0x70] sm:$0xff]  ;;  %v519_v3 = vpack.c.bf16 %v93_v59, %v90_v58  ;;  %v116_v4 = vld [vmem:[#allocation2 + $0x220] sm:$0xff] }
  0x37   :  { %504 = vmatpush1.bf16.msra.mxu0 %v503_v25  ;;  %558 = vmatprep.subr.bf16.mxu1 %v557_v53  ;;  %v65_v2 = vld [vmem:[#allocation2 + $0x88] sm:$0xff]  ;;  %v119_v5 = vld [vmem:[#allocation2 + $0x238] sm:$0xff]  ;;  %v521_v6 = vpack.c.bf16 %v100_v62, %v97_v61  ;;  %v96_v7 = vld [vmem:[#allocation2 + $0x180] sm:$0xff] }
  0x38   :  { %506 = vmatprep.subr.bf16.mxu0 %v505_v26  ;;  %v99_v8 = vld [vmem:[#allocation2 + $0x198] sm:$0xff]  ;;  %v106_v10 = vld [vmem:[#allocation2 + $0x1d0] sm:$0xff]  ;;  %v563_v11 = vpack.c.bf16 %v65_v2, %v62_v1  ;;  %v565_v12 = vpack.c.bf16 %v119_v5, %v116_v4  ;;  %v68_v13 = vld [vmem:[#allocation2 + $0xa0] sm:$0xff] }
  0x39   :  { %v103_v9 = vld [vmem:[#allocation2 + $0x1b8] sm:$0xff]  ;;  %v523_v15 = vpack.c.bf16 %v99_v8, %v96_v7  ;;  %v122_v16 = vld [vmem:[#allocation2 + $0x250] sm:$0xff]  ;;  %v125_v17 = vld [vmem:[#allocation2 + $0x268] sm:$0xff] }
  0x3a   :  { %560 = vmatpush3.bf16.msra.mxu1 %v559_v63  ;;  %v71_v14 = vld [vmem:[#allocation2 + $0xb8] sm:$0xff]  ;;  %v525_v18 = vpack.c.bf16 %v106_v10, %v103_v9  ;;  %v102_v19 = vld [vmem:[#allocation2 + $0x1b0] sm:$0xff]  ;;  %v105_v20 = vld [vmem:[#allocation2 + $0x1c8] sm:$0xff]  ;;  %v569_v24 = vpack.c.bf16 %v125_v17, %v122_v16  ;;  %v703_v16 = vmov 0.0|0.0  }
  0x3b   :  { %508 = vmatpush1.bf16.msra.mxu0 %v507_v31  ;;  %562 = vmatprep.subr.bf16.mxu1 %v561_v0  ;;  %v109_v21 = vld [vmem:[#allocation2 + $0x1e8] sm:$0xff]  ;;  %v112_v22 = vld [vmem:[#allocation2 + $0x200] sm:$0xff]  ;;  %v567_v23 = vpack.c.bf16 %v71_v14, %v68_v13  ;;  %v74_v25 = vld [vmem:[#allocation2 + $0xd0] sm:$0xff]  ;;  %v527_v27 = vpack.c.bf16 %v105_v20, %v102_v19 }
  0x3c   :  { %510 = vmatprep.subr.bf16.mxu0 %v509_v32  ;;  %v77_v26 = vld [vmem:[#allocation2 + $0xe8] sm:$0xff]  ;;  %v128_v28 = vld [vmem:[#allocation2 + $0x280] sm:$0xff]  ;;  %v131_v29 = vld [vmem:[#allocation2 + $0x298] sm:$0xff]  ;;  %v529_v30 = vpack.c.bf16 %v112_v22, %v109_v21 }
  0x3d   :  { %v108_v31 = vld [vmem:[#allocation2 + $0x1e0] sm:$0xff]  ;;  %v111_v32 = vld [vmem:[#allocation2 + $0x1f8] sm:$0xff]  ;;  %v118_v34 = vld [vmem:[#allocation2 + $0x230] sm:$0xff]  ;;  %v571_v35 = vpack.c.bf16 %v77_v26, %v74_v25  ;;  %v573_v36 = vpack.c.bf16 %v131_v29, %v128_v28 }
  0x3e   :  { %564 = vmatpush3.bf16.msra.mxu1 %v563_v11  ;;  %v115_v33 = vld [vmem:[#allocation2 + $0x218] sm:$0xff]  ;;  %v531_v39 = vpack.c.bf16 %v111_v32, %v108_v31  ;;  %v137_v41 = vld [vmem:[#allocation2 + $0x2c8] sm:$0xff]  ;;  %v114_v44 = vld [vmem:[#allocation2 + $0x210] sm:$0xff] }
  0x3f   :  { %512 = vmatpush1.bf16.msra.mxu0 %v511_v37  ;;  %566 = vmatprep.subr.bf16.mxu1 %v565_v12  ;;  %v80_v37 = vld [vmem:[#allocation2 + $0x100] sm:$0xff]  ;;  %v83_v38 = vld [vmem:[#allocation2 + $0x118] sm:$0xff]  ;;  %v533_v42 = vpack.c.bf16 %v118_v34, %v115_v33  ;;  %v117_v45 = vld [vmem:[#allocation2 + $0x228] sm:$0xff] }
  0x40   :  { %514 = vmatprep.subr.bf16.mxu0 %v513_v40  ;;  %v134_v40 = vld [vmem:[#allocation2 + $0x2b0] sm:$0xff]  ;;  %v121_v46 = vld [vmem:[#allocation2 + $0x248] sm:$0xff]  ;;  %v124_v47 = vld [vmem:[#allocation2 + $0x260] sm:$0xff]  ;;  %v575_v48 = vpack.c.bf16 %v83_v38, %v80_v37  ;;  %v535_v52 = vpack.c.bf16 %v117_v45, %v114_v44  ;;  %v705_v45 = vmov 0.0  }
  0x41   :  { %v577_v49 = vpack.c.bf16 %v137_v41, %v134_v40  ;;  %v86_v50 = vld [vmem:[#allocation2 + $0x130] sm:$0xff]  ;;  %v140_v53 = vld [vmem:[#allocation2 + $0x2e0] sm:$0xff]  ;;  %v143_v54 = vld [vmem:[#allocation2 + $0x2f8] sm:$0xff]  ;;  %v537_v55 = vpack.c.bf16 %v124_v47, %v121_v46 }
  0x42   :  { %568 = vmatpush3.bf16.msra.mxu1 %v567_v23  ;;  %v120_v56 = vld [vmem:[#allocation2 + $0x240] sm:$0xff]  ;;  %v127_v58 = vld [vmem:[#allocation2 + $0x278] sm:$0xff]  ;;  %v130_v59 = vld [vmem:[#allocation2 + $0x290] sm:$0xff]  ;;  %v581_v61 = vpack.c.bf16 %v143_v54, %v140_v53 }
  0x43   :  { %516 = vmatpush1.bf16.msra.mxu0 %v515_v51  ;;  %570 = vmatprep.subr.bf16.mxu1 %v569_v24  ;;  %v89_v51 = vld [vmem:[#allocation2 + $0x148] sm:$0xff]  ;;  %v92_v62 = vld [vmem:[#allocation2 + $0x160] sm:$0xff]  ;;  %v95_v63 = vld [vmem:[#allocation2 + $0x178] sm:$0xff]  ;;  %v541_v1 = vpack.c.bf16 %v130_v59, %v127_v58 }
  0x44   :  { %518 = vmatprep.subr.bf16.mxu0 %v517_v57  ;;  %v123_v57 = vld [vmem:[#allocation2 + $0x258] sm:$0xff]  ;;  %v579_v60 = vpack.c.bf16 %v89_v51, %v86_v50  ;;  %v126_v2 = vld [vmem:[#allocation2 + $0x270] sm:$0xff]  ;;  %v133_v4 = vld [vmem:[#allocation2 + $0x2a8] sm:$0xff] }
  0x45   :  { %v539_v0 = vpack.c.bf16 %v123_v57, %v120_v56  ;;  %v136_v5 = vld [vmem:[#allocation2 + $0x2c0] sm:$0xff]  ;;  %v295_v8 = vld [vmem:[#allocation5 + $0x8] sm:$0xff]  ;;  %v135_v12 = vld [vmem:[#allocation2 + $0x2b8] sm:$0xff] }
  0x46   :  { %572 = vmatpush3.bf16.msra.mxu1 %v571_v35  ;;  %v294_v7 = vld [vmem:[#allocation5] sm:$0xff]  ;;  %v545_v10 = vpack.c.bf16 %v136_v5, %v133_v4  ;;  %v139_v13 = vld [vmem:[#allocation2 + $0x2d8] sm:$0xff]  ;;  %v142_v14 = vld [vmem:[#allocation2 + $0x2f0] sm:$0xff] }
  0x47   :  { %520 = vmatpush1.bf16.msra.mxu0 %v519_v3  ;;  %574 = vmatprep.subr.bf16.mxu1 %v573_v36  ;;  %v129_v3 = vld [vmem:[#allocation2 + $0x288] sm:$0xff]  ;;  %v132_v11 = vld [vmem:[#allocation2 + $0x2a0] sm:$0xff]  ;;  %v296_v17 = vld [vmem:[#allocation5 + $0x10] sm:$0xff]  ;;  %v549_v21 = vpack.c.bf16 %v142_v14, %v139_v13 }
  0x48   :  { %522 = vmatprep.subr.bf16.mxu0 %v521_v6  ;;  %v583_v6 = vpack.c.bf16 %v95_v63, %v92_v62  ;;  %v543_v9 = vpack.c.bf16 %v129_v3, %v126_v2  ;;  %v547_v19 = vpack.c.bf16 %v135_v12, %v132_v11  ;;  %v46_v20 = vld [vmem:[%s780_s0] sm:$0xff]  ;;  %v141_v23 = vld [vmem:[#allocation2 + $0x2e8] sm:$0xff]  ;;  %v298_v25 = vld [vmem:[#allocation5 + $0x20] sm:$0xff]  ;;  %s706_s0 = smov [#allocation7]  }
  0x49   :  { %v138_v22 = vld [vmem:[#allocation2 + $0x2d0] sm:$0xff]  ;;  %v299_v26 = vld [vmem:[#allocation5 + $0x28] sm:$0xff]  ;;  %v302_v32 = vld [vmem:[#allocation5 + $0x40] sm:$0xff]  ;;  %s392_s18 = sshll.u32 %s706_s0, 4  ;;  %s393_s18 = int_to_ptr.vmem [resolvable:$true] %s392_s18 }
  0x4a   :  { %576 = vmatpush3.bf16.msra.mxu1 %v575_v48  ;;  %v592_v28 = vpack.c.bf16 %v299_v26, %v298_v25  ;;  %v300_v29 = vld [vmem:[#allocation5 + $0x30] sm:$0xff]  ;;  %v303_v33 = vld [vmem:[#allocation5 + $0x48] sm:$0xff]  ;;  %v305_v36 = vld [vmem:[#allocation5 + $0x58] sm:$0xff]  ;;  %s669_s19 = scalar_lea.vmem %s393_s18, 128  ;;  %p674_p3 = scmp.lt.s32.totalorder %s393_s18, %s393_s18 }
  0x4b   :  { %524 = vmatpush1.bf16.msra.mxu0 %v523_v15  ;;  %578 = vmatprep.subr.bf16.mxu1 %v577_v49  ;;  %v586_v15 = vpack.c.bf16 %v295_v8, %v294_v7  ;;  %v598_v34 = vpack.c.bf16 %v303_v33, %v302_v32  ;;  %v304_v35 = vld [vmem:[#allocation5 + $0x50] sm:$0xff]  ;;  %v306_v38 = vld [vmem:[#allocation5 + $0x60] sm:$0xff]  ;;  %p670_p2 = scmp.ne.s32.totalorder %s393_s18, %s669_s19  ;;  %p675_p4 = scmp.lt.s32.totalorder %s669_s19, %s669_s19 }
  0x4c   :  { %526 = vmatprep.subr.bf16.mxu0 %v525_v18  ;;  %v297_v18 = vld [vmem:[#allocation5 + $0x18] sm:$0xff]  ;;  %v601_v37 = vpack.c.bf16 %v305_v36, %v304_v35  ;;  %v308_v41 = vld [vmem:[#allocation5 + $0x70] sm:$0xff] }
  0x4d   :  { %v589_v24 = vpack.c.bf16 %v297_v18, %v296_v17  ;;  %p676_p5 = por %p675_p4, %p674_p3 }
  0x4e   :  { %580 = vmatpush3.bf16.msra.mxu1 %v579_v60 }
  0x4f   :  { %528 = vmatpush1.bf16.msra.mxu0 %v527_v27  ;;  %582 = vmatprep.subr.bf16.mxu1 %v581_v61  ;;  %v551_v27 = vpack.c.bf16 %v141_v23, %v138_v22  ;;  %p677_p6 = pnand %p676_p5, %p670_p2 }
  0x50   :  { %530 = vmatprep.subr.bf16.mxu0 %v529_v30  ;;  %v301_v30 = vld [vmem:[#allocation5 + $0x38] sm:$0xff] }
  0x51   :  { %v595_v31 = vpack.c.bf16 %v301_v30, %v300_v29 }
  0x52   :  { %584 = vmatpush3.bf16.msra.mxu1 %v583_v6 }
  0x53   :  { %532 = vmatpush1.bf16.msra.mxu0 %v531_v39  ;;  %585 = vmatprep.subr.bf16.mxu1 %v703_v16  ;;  %v307_v39 = vld [vmem:[#allocation5 + $0x68] sm:$0xff] }
  0x54   :  { %534 = vmatprep.subr.bf16.mxu0 %v533_v42  ;;  %v604_v40 = vpack.c.bf16 %v307_v39, %v306_v38  ;;  %v309_v42 = vld [vmem:[#allocation5 + $0x78] sm:$0xff] }
  0x55   :  { %280 = vmatmul.mubr.f32.vlgmr.msra.gmra.mrb[0].mxu1 %v46_v20  ;;  %v607_v44 = vpack.c.bf16 %v309_v42, %v308_v41 }
  0x56   :  { %587 = vmatpush3.bf16.msra.mxu1 %v586_v15  ;;  %486 = vmatprep.mubr.msk.f32.mxu1 %vm704_vm0, %v705_v45 }
  0x57   :  { %536 = vmatpush1.bf16.msra.mxu0 %v535_v52  ;;  %588 = vmatprep.subr.bf16.mxu1 %v703_v16 }
  0x58   :  { %538 = vmatprep.subr.bf16.mxu0 %v537_v55 }
  0x5a   :  { %590 = vmatpush3.bf16.msra.mxu1 %v589_v24 }
  0x5b   :  { %540 = vmatpush1.bf16.msra.mxu0 %v539_v0  ;;  %591 = vmatprep.subr.bf16.mxu1 %v703_v16 }
  0x5c   :  { %542 = vmatprep.subr.bf16.mxu0 %v541_v1 }
  0x5e   :  { %593 = vmatpush3.bf16.msra.mxu1 %v592_v28 }
  0x5f   :  { %544 = vmatpush1.bf16.msra.mxu0 %v543_v9  ;;  %594 = vmatprep.subr.bf16.mxu1 %v703_v16 }
  0x60   :  { %546 = vmatprep.subr.bf16.mxu0 %v545_v10 }
  0x62   :  { %596 = vmatpush3.bf16.msra.mxu1 %v595_v31 }
  0x63   :  { %548 = vmatpush1.bf16.msra.mxu0 %v547_v19  ;;  %597 = vmatprep.subr.bf16.mxu1 %v703_v16 }
  0x64   :  { %550 = vmatprep.subr.bf16.mxu0 %v549_v21 }
  0x66   :  { %599 = vmatpush3.bf16.msra.mxu1 %v598_v34 }
  0x67   :  { %552 = vmatpush1.bf16.msra.mxu0 %v551_v27  ;;  %600 = vmatprep.subr.bf16.mxu1 %v703_v16 }
  0x6a   :  { %209 = vmatmul.mubr.f32.vlgmr.msra.gmra.mrb[0].mxu0 %v46_v20  ;;  %602 = vmatpush3.bf16.msra.mxu1 %v601_v37 }
  0x6b   :  { %603 = vmatprep.subr.bf16.mxu1 %v703_v16 }
  0x6e   :  { %605 = vmatpush3.bf16.msra.mxu1 %v604_v40 }
  0x6f   :  { %606 = vmatprep.subr.bf16.mxu1 %v703_v16 }
  0x72   :  { %608 = vmatpush3.bf16.msra.mxu1 %v607_v44 }
 0x128   :  { %v434_v46 = vpop.f32.mrb[0].mxu1 }
 0x129   :  { %v435_v47 = vpop.f32.mrb[1].mxu1 }
 0x12a   :  { %v436_v48 = vadd.f32 %v435_v47, %v434_v46 }
 0x13d   :  { %v210_v49 = vpop.f32.mrb[0].mxu0 }
 0x13e   :  { %v285_v50 = vmul.f32 0.5, %v210_v49  ;;  %v212_v51 = vpop.f32.mrb[1].mxu0 }
 0x13f   :  { %v289_v56 = vmul.f32 0.5, %v212_v51 }
 0x140   :  { %619 = vtanh.f32 %v285_v50 }
 0x141   :  { %621 = vtanh.f32 %v289_v56 }
 0x14a   :  { %v620_v52 = vpop.eup %619 }
 0x14b   :  { %v287_v53 = vadd.f32 1.0, %v620_v52  ;;  %v622_v60 = vpop.eup %621 }
 0x14c   :  { %v291_v61 = vadd.f32 1.0, %v622_v60 }
 0x14d   :  { %v288_v54 = vmul.f32 0.5, %v287_v53 }
 0x14e   :  { %v292_v62 = vmul.f32 0.5, %v291_v61 }
 0x14f   :  { %v293_v55 = vmul.f32 %v288_v54, %v759_v43 }
 0x150   :  { %v382_v0 = vsub.f32 1.0, %v292_v62 }
 0x151   :  { %487 = vmatmul.mubr.f32.vlgmr.msra.gmra.mrb[2].mxu1 %v293_v55 }
 0x224   :  { %v376_v57 = vpop.f32.mrb[2].mxu1 }
 0x225   :  { %v380_v58 = vadd.f32 %v436_v48, %v376_v57  ;;  %v488_v59 = vpop.f32.mrb[3].mxu1 }
 0x227   :  { %623 = vtanh.f32 %v380_v58 }
 0x231   :  { %v624_v63 = vpop.eup %623 }
 0x232   :  { %v383_v1 = vsub.f32 %v624_v63, %v759_v43 }
 0x234   :  { %v384_v2 = vmul.f32 %v383_v1, %v382_v0 }
 0x236   :  { %385 = vst [vmem:[#allocation7] sm:$0xff] %v384_v2 }
 0x237   :  { %680 = shalt.err (!%p677_p6)
}
 0x238   :  { %s681_s22 = scalar_lea.hbm %s784_s4, 128 }
 0x239   :  { %p682_p7 = scmp.ne.s32.totalorder %s784_s4, %s681_s22  ;;  %p685_p8 = scmp.lt.u32.totalorder %s681_s22, %s784_s4 }
 0x23b   :  { %p687_p9 = pnand %p685_p8, %p682_p7 }
 0x23d   :  { %690 = shalt.err (!%p687_p9)
}
 0x23e   :  { %395 = dma.vmem_to_hbm [thread:$0]  %s393_s18, 128, %s784_s4, [#allocation4]  }
 0x23f   :  { %695 = dma.done.wait [#allocation4], 128  }
 0x240   :  { %696 = vsyncadd [#allocation4], 4294967168 }
 0x241   :  { %399 = vsyncpa [#allocation3], 1 }
 0x242   :  { %400 = vsyncpa [#allocation6], 1 }
 0x243   :  { %401 = vsyncpa [#allocation4], 1 }

</bundles_post_ra>
